<compile_context>
chip_gen: v7x
topology: tpu7x:2x2x1
jax: 0.10.0
libtpu: 0.0.40
codegen_flags: <defaults>
</compile_context>

<pallas_src>
import functools
import numpy as np
import jax
import jax.numpy as jnp
from jax import lax
from jax.experimental import pallas as pl
from jax.experimental.pallas import tpu as pltpu

_OUT_ROWS = 8      # sublane-padded rows of the packed output slab
_OUT_LANES = 128   # lane-dense width of the packed output slab


# ---------------------------------------------------------------------------
# Fused Pallas kernel: patch-embed -> cross-attention -> MLP -> heads
# One grid step == one batch element.
# ---------------------------------------------------------------------------
def _fused_kernel(x_ref, pw_ref, srcb_ref, pek_ref, tok_ref,
                  wq_ref, wkv_ref, wo_ref,
                  w1_ref, b1_ref, w2_ref, b2_ref, wheads_ref,
                  out_ref,
                  *, hw, emb_dim, num_masks):
    C = emb_dim

    # ---- patch embedding for this batch element only (per-tile, not batch)
    x = x_ref[0]                                                        # [HW, Kin]
    emb = jnp.dot(x, pw_ref[...], preferred_element_type=jnp.float32)  # [HW, C]

    # src = image embedding + (pos_embed + conv bias + no-mask dense embedding)
    src = emb + srcb_ref[...]                                           # [HW, C]
    tok = tok_ref[0]                                                    # [T,  C]

    # ---- cross-attention: tokens attend to (src + pe)
    # wq already carries the 1/sqrt(C) attention scale (folded at init time).
    q = jnp.dot(tok, wq_ref[...], preferred_element_type=jnp.float32)    # [T, C]
    kv = jnp.dot(src, wkv_ref[...], preferred_element_type=jnp.float32)  # [HW, 2C]
    k = kv[:, :C] + pek_ref[...]                                         # [HW, C]
    v = kv[:, C:]                                                        # [HW, C]
    # q @ k^T without materializing a transpose: contract both on the C axis.
    scores = lax.dot_general(q, k, (((1,), (1,)), ((), ())),
                             preferred_element_type=jnp.float32)         # [T, HW]
    scores = scores - jnp.max(scores, axis=-1, keepdims=True)
    p = jnp.exp(scores)
    # approx reciprocal -> EUP slot (use approx=False for bit-parity tests).
    p = p * pl.reciprocal(jnp.sum(p, axis=-1, keepdims=True), approx=True)
    attn = jnp.dot(jnp.dot(p, v, preferred_element_type=jnp.float32),
                   wo_ref[...], preferred_element_type=jnp.float32)
    tok = tok + attn

    # ---- token MLP (residual)
    h = jnp.dot(tok, w1_ref[...], preferred_element_type=jnp.float32) + b1_ref[...]
    h = jnp.maximum(h, 0.0)
    tok = tok + jnp.dot(h, w2_ref[...], preferred_element_type=jnp.float32) + b2_ref[...]

    # ---- heads: token 0 -> IoU, tokens 1..num_masks -> hypernetwork weights
    heads = jnp.dot(tok[0:1 + num_masks], wheads_ref[...],
                    preferred_element_type=jnp.float32)                  # [1+Nm, C+Nm]
    hyper = heads[1:1 + num_masks, :C]                                   # [Nm, C]
    iou = heads[0:1, C:]                                                 # [1,  Nm]
    # hyper @ src^T without transposing src (contract both on C).
    masks = lax.dot_general(hyper, src, (((1,), (1,)), ((), ())),
                            preferred_element_type=jnp.float32)          # [Nm, HW]

    # ---- pack both outputs into one lane-dense [8, 128] slab; one full store
    masks_rows = jnp.concatenate(
        [masks, jnp.zeros((num_masks, _OUT_LANES - hw), jnp.float32)], axis=1)
    iou_row = jnp.concatenate(
        [iou, jnp.zeros((1, _OUT_LANES - num_masks), jnp.float32)], axis=1)
    tail = jnp.zeros((_OUT_ROWS - num_masks - 1, _OUT_LANES), jnp.float32)
    out_ref[0] = jnp.concatenate([masks_rows, iou_row, tail],
                                 axis=0).astype(out_ref.dtype)


def fused_forward(x, patch_w, src_bias, pe_k, tokens,
                  wq, wkv, wo, w1, b1, w2, b2, wheads,
                  *, hw, emb_dim, num_masks):
    B, _, Kin = x.shape
    T = tokens.shape[1]
    C = emb_dim
    Cm = w1.shape[1]
    C2 = wkv.shape[1]
    CH = wheads.shape[1]

    kernel = functools.partial(_fused_kernel, hw=hw, emb_dim=C,
                               num_masks=num_masks)

    def resident(shape):
        # Weights / batch-invariant tensors: constant index_map -> same VMEM
        # block reused across every grid step (no re-DMA).
        n = len(shape)
        return pl.BlockSpec(shape, lambda b, _n=n: (0,) * _n)

    return pl.pallas_call(
        kernel,
        out_shape=jax.ShapeDtypeStruct((B, _OUT_ROWS, _OUT_LANES), jnp.float32),
        grid_spec=pltpu.PrefetchScalarGridSpec(
            num_scalar_prefetch=0,
            grid=(B,),
            in_specs=[
                pl.BlockSpec((1, hw, Kin), lambda b: (b, 0, 0)),   # image tile / batch
                resident((Kin, C)),                                 # patch-embed weight
                resident((hw, C)),                                  # folded src bias
                resident((hw, C)),                                  # dense_pe @ wk
                pl.BlockSpec((1, T, C), lambda b: (b, 0, 0)),       # tokens / batch
                resident((C, C)),                                   # wq (scale folded)
                resident((C, C2)),                                  # [wk | wv]
                resident((C, C)),                                   # wo
                resident((C, Cm)), resident((1, Cm)),               # MLP layer 1
                resident((Cm, C)), resident((1, C)),                # MLP layer 2
                resident((C, CH)),                                  # [whyper | wiou]
            ],
            out_specs=pl.BlockSpec((1, _OUT_ROWS, _OUT_LANES),
                                   lambda b: (b, 0, 0)),
        ),
        compiler_params=pltpu.CompilerParams(
            # batch axis is independent: shards across the 2 TCs on v7x,
            # neutral (but harmless) on single-TC v5e/v6e.
            dimension_semantics=("parallel",),
            vmem_limit_bytes=32 * 1024 * 1024,
        ),
    )(x, patch_w, src_bias, pe_k, tokens,
      wq, wkv, wo, w1, b1, w2, b2, wheads)


# ---------------------------------------------------------------------------
# Parameter construction (deterministic, in-script)
# ---------------------------------------------------------------------------
def init_params(key, *, in_chans=3, patch=4, embed_dim=32, mlp_dim=64,
                grid_hw=16, num_mask_tokens=4, num_masks=3):
    ks = jax.random.split(key, 16)
    s = 0.02
    p = {}
    p["patch_w"] = s * jax.random.normal(ks[0], (in_chans * patch * patch, embed_dim), jnp.float32)
    p["patch_b"] = jnp.zeros((1, embed_dim), jnp.float32)
    p["pos_embed"] = s * jax.random.normal(ks[1], (grid_hw, embed_dim), jnp.float32)
    p["pe_gauss"] = jax.random.normal(ks[2], (2, embed_dim // 2), jnp.float32)
    p["point_embed"] = s * jax.random.normal(ks[3], (1, 1, embed_dim), jnp.float32)
    p["no_mask_embed"] = s * jax.random.normal(ks[4], (1, embed_dim), jnp.float32)
    p["mask_tokens"] = s * jax.random.normal(ks[5], (num_mask_tokens, embed_dim), jnp.float32)
    # 1/sqrt(C) attention scale is folded into wq at construction time so the
    # kernel never multiplies the [T, HW] score tile by a scalar.
    attn_scale = 1.0 / float(np.sqrt(embed_dim))
    p["dec_wq"] = attn_scale * s * jax.random.normal(ks[6], (embed_dim, embed_dim), jnp.float32)
    p["dec_wk"] = s * jax.random.normal(ks[7], (embed_dim, embed_dim), jnp.float32)
    p["dec_wv"] = s * jax.random.normal(ks[8], (embed_dim, embed_dim), jnp.float32)
    p["dec_wo"] = s * jax.random.normal(ks[9], (embed_dim, embed_dim), jnp.float32)
    p["dec_w1"] = s * jax.random.normal(ks[10], (embed_dim, mlp_dim), jnp.float32)
    p["dec_b1"] = jnp.zeros((1, mlp_dim), jnp.float32)
    p["dec_w2"] = s * jax.random.normal(ks[11], (mlp_dim, embed_dim), jnp.float32)
    p["dec_b2"] = jnp.zeros((1, embed_dim), jnp.float32)
    p["dec_whyper"] = s * jax.random.normal(ks[12], (embed_dim, embed_dim), jnp.float32)
    p["dec_wiou"] = s * jax.random.normal(ks[13], (embed_dim, num_masks), jnp.float32)
    return p


# ---------------------------------------------------------------------------
# Prompt-encoder glue (tiny elementwise math, plain JAX)
# ---------------------------------------------------------------------------
def _fourier_pe(coords01, gauss):
    c = 2.0 * coords01 - 1.0
    proj = (c @ gauss) * (2.0 * np.pi)
    return jnp.concatenate([jnp.sin(proj), jnp.cos(proj)], axis=-1)


def prompt_encoder(points, img_size, grid_h, grid_w, params):
    # sparse embeddings from point prompts
    sparse = _fourier_pe(points / float(img_size), params["pe_gauss"]) \
        + params["point_embed"]                                    # [B, Np, C]
    # dense positional encoding for the image grid (batch-invariant)
    yy = (jnp.arange(grid_h, dtype=jnp.float32) + 0.5) / grid_h
    xx = (jnp.arange(grid_w, dtype=jnp.float32) + 0.5) / grid_w
    gy, gx = jnp.meshgrid(yy, xx, indexing="ij")
    grid_coords = jnp.stack([gx, gy], axis=-1).reshape(grid_h * grid_w, 2)
    dense_pe = _fourier_pe(grid_coords, params["pe_gauss"])        # [HW, C]
    return sparse, dense_pe


# ---------------------------------------------------------------------------
# Full forward (= MedSAMCausalPrompt_Lite.forward)
# ---------------------------------------------------------------------------
def medsam_lite_forward(image, points, params, *, patch=4, num_masks=3,
                        multimask_output=False, uncertainty_output=False):
    B, Cin, H, W = image.shape
    h, w = H // patch, W // patch
    HW = h * w
    C = params["patch_w"].shape[1]

    # --- image_encoder front-end: patchify (pure data movement, XLA glue) ---
    x = image.reshape(B, Cin, h, patch, w, patch)
    x = jnp.transpose(x, (0, 2, 4, 1, 3, 5)).reshape(B, HW, Cin * patch * patch)

    # --- prompt_encoder ---
    sparse_embeddings, dense_pe = prompt_encoder(points, H, h, w, params)

    # batch-invariant folds done once (constant-fold under jit; no broadcast
    # [B,HW,C] arrays, no per-batch recomputation of pe@wk inside the kernel)
    src_bias = params["pos_embed"] + params["patch_b"] + params["no_mask_embed"]   # [HW, C]
    pe_k = dense_pe @ params["dec_wk"]                                             # [HW, C]
    wkv = jnp.concatenate([params["dec_wk"], params["dec_wv"]], axis=1)            # [C, 2C]
    wheads = jnp.concatenate([params["dec_whyper"], params["dec_wiou"]], axis=1)   # [C, C+Nm]

    tokens = jnp.concatenate(
        [jnp.broadcast_to(params["mask_tokens"][None],
                          (B,) + params["mask_tokens"].shape),
         sparse_embeddings], axis=1)                                               # [B, T, C]

    # --- fused Pallas kernel: patch-embed + mask_decoder ---
    packed = fused_forward(
        x, params["patch_w"], src_bias, pe_k, tokens,
        params["dec_wq"], wkv, params["dec_wo"],
        params["dec_w1"], params["dec_b1"], params["dec_w2"], params["dec_b2"],
        wheads, hw=HW, emb_dim=C, num_masks=num_masks)                             # [B, 8, 128]

    # unpack the lane-dense output slab
    low_res_masks = packed[:, :num_masks, :HW].reshape(B, num_masks, h, w)
    iou_pred = packed[:, num_masks, :num_masks]

    if not multimask_output:
        masks_out = low_res_masks[:, :1]
        iou_out = iou_pred[:, :1]
    else:
        masks_out = low_res_masks
        iou_out = iou_pred

    prediction_dict = {"masks": masks_out, "iou_predictions": iou_out}
    if uncertainty_output:
        prediction_dict["uncertainty"] = low_res_masks  # Lite: low-res logits stand in
    return prediction_dict


# ---------------------------------------------------------------------------
if __name__ == "__main__":
    key = jax.random.PRNGKey(0)
    k_img, k_pts, k_par = jax.random.split(key, 3)

    B, Cin, H, W = 2, 3, 16, 16
    Np = 2
    params = init_params(k_par, in_chans=Cin, patch=4, embed_dim=32,
                         mlp_dim=64, grid_hw=(H // 4) * (W // 4),
                         num_mask_tokens=4, num_masks=3)

    image = jax.random.normal(k_img, (B, Cin, H, W), jnp.float32)     # NCHW
    points = jax.random.uniform(k_pts, (B, Np, 2), jnp.float32,
                                minval=0.0, maxval=float(H))

    out = medsam_lite_forward(image, points, params,
                              multimask_output=False,
                              uncertainty_output=False)
    jax.block_until_ready(out)
    assert out["masks"].shape == (B, 1, H // 4, W // 4)
    assert out["iou_predictions"].shape == (B, 1)
    print("KERNEL_OK")
</pallas_src>

<mosaic_0001>
module attributes {stable_mosaic.version = 11 : i64} {
  func.func @_fused_kernel(%arg0: i32, %arg1: memref<1x16x48xf32, #tpu.memory_space<vmem>>, %arg2: memref<48x32xf32, #tpu.memory_space<vmem>>, %arg3: memref<16x32xf32, #tpu.memory_space<vmem>>, %arg4: memref<16x32xf32, #tpu.memory_space<vmem>>, %arg5: memref<1x6x32xf32, #tpu.memory_space<vmem>>, %arg6: memref<32x32xf32, #tpu.memory_space<vmem>>, %arg7: memref<32x64xf32, #tpu.memory_space<vmem>>, %arg8: memref<32x32xf32, #tpu.memory_space<vmem>>, %arg9: memref<32x64xf32, #tpu.memory_space<vmem>>, %arg10: memref<1x64xf32, #tpu.memory_space<vmem>>, %arg11: memref<64x32xf32, #tpu.memory_space<vmem>>, %arg12: memref<1x32xf32, #tpu.memory_space<vmem>>, %arg13: memref<32x35xf32, #tpu.memory_space<vmem>>, %arg14: memref<1x8x128xf32, #tpu.memory_space<vmem>>) attributes {dimension_semantics = [#tpu.dimension_semantics<parallel>], iteration_bounds = array<i64: 2>, scalar_prefetch = 0 : i64, scratch_operands = 0 : i64, tpu.core_type = #tpu.core_type<tc>, window_params = [{transform_indices = @transform_0, window_bounds = array<i64: 1, 16, 48>}, {pipeline_mode = #tpu.pipeline_mode<synchronous>, transform_indices = @transform_1, window_bounds = array<i64: 48, 32>}, {pipeline_mode = #tpu.pipeline_mode<synchronous>, transform_indices = @transform_2, window_bounds = array<i64: 16, 32>}, {pipeline_mode = #tpu.pipeline_mode<synchronous>, transform_indices = @transform_3, window_bounds = array<i64: 16, 32>}, {transform_indices = @transform_4, window_bounds = array<i64: 1, 6, 32>}, {pipeline_mode = #tpu.pipeline_mode<synchronous>, transform_indices = @transform_5, window_bounds = array<i64: 32, 32>}, {pipeline_mode = #tpu.pipeline_mode<synchronous>, transform_indices = @transform_6, window_bounds = array<i64: 32, 64>}, {pipeline_mode = #tpu.pipeline_mode<synchronous>, transform_indices = @transform_7, window_bounds = array<i64: 32, 32>}, {pipeline_mode = #tpu.pipeline_mode<synchronous>, transform_indices = @transform_8, window_bounds = array<i64: 32, 64>}, {pipeline_mode = #tpu.pipeline_mode<synchronous>, transform_indices = @transform_9, window_bounds = array<i64: 1, 64>}, {pipeline_mode = #tpu.pipeline_mode<synchronous>, transform_indices = @transform_10, window_bounds = array<i64: 64, 32>}, {pipeline_mode = #tpu.pipeline_mode<synchronous>, transform_indices = @transform_11, window_bounds = array<i64: 1, 32>}, {pipeline_mode = #tpu.pipeline_mode<synchronous>, transform_indices = @transform_12, window_bounds = array<i64: 32, 35>}, {transform_indices = @transform_13, window_bounds = array<i64: 1, 8, 128>}]} {
    %c0 = arith.constant 0 : index
    %c0_0 = arith.constant 0 : index
    %c0_1 = arith.constant 0 : index
    %0 = vector.load %arg1[%c0, %c0_0, %c0_1] : memref<1x16x48xf32, #tpu.memory_space<vmem>>, vector<1x16x48xf32>
    %1 = vector.shape_cast %0 : vector<1x16x48xf32> to vector<16x48xf32>
    %c0_2 = arith.constant 0 : index
    %c0_3 = arith.constant 0 : index
    %2 = vector.load %arg2[%c0_2, %c0_3] : memref<48x32xf32, #tpu.memory_space<vmem>>, vector<48x32xf32>
    %cst = arith.constant dense<0.000000e+00> : vector<16x32xf32>
    %3 = tpu.matmul %1, %2, %cst {dimension_numbers = #tpu.dot_dimension_numbers<[1], [0], [0], [1], [0, 0, 1, 1], [], []>} : vector<16x48xf32>, vector<48x32xf32>, vector<16x32xf32> -> vector<16x32xf32>
    %c0_4 = arith.constant 0 : index
    %c0_5 = arith.constant 0 : index
    %4 = vector.load %arg3[%c0_4, %c0_5] : memref<16x32xf32, #tpu.memory_space<vmem>>, vector<16x32xf32>
    %5 = arith.addf %3, %4 : vector<16x32xf32>
    %c0_6 = arith.constant 0 : index
    %c0_7 = arith.constant 0 : index
    %c0_8 = arith.constant 0 : index
    %6 = vector.load %arg5[%c0_6, %c0_7, %c0_8] : memref<1x6x32xf32, #tpu.memory_space<vmem>>, vector<1x6x32xf32>
    %7 = vector.shape_cast %6 : vector<1x6x32xf32> to vector<6x32xf32>
    %c0_9 = arith.constant 0 : index
    %c0_10 = arith.constant 0 : index
    %8 = vector.load %arg6[%c0_9, %c0_10] : memref<32x32xf32, #tpu.memory_space<vmem>>, vector<32x32xf32>
    %cst_11 = arith.constant dense<0.000000e+00> : vector<6x32xf32>
    %9 = tpu.matmul %7, %8, %cst_11 {dimension_numbers = #tpu.dot_dimension_numbers<[1], [0], [0], [1], [0, 0, 1, 1], [], []>} : vector<6x32xf32>, vector<32x32xf32>, vector<6x32xf32> -> vector<6x32xf32>
    %c0_12 = arith.constant 0 : index
    %c0_13 = arith.constant 0 : index
    %10 = vector.load %arg7[%c0_12, %c0_13] : memref<32x64xf32, #tpu.memory_space<vmem>>, vector<32x64xf32>
    %cst_14 = arith.constant dense<0.000000e+00> : vector<16x64xf32>
    %11 = tpu.matmul %5, %10, %cst_14 {dimension_numbers = #tpu.dot_dimension_numbers<[1], [0], [0], [1], [0, 0, 1, 1], [], []>} : vector<16x32xf32>, vector<32x64xf32>, vector<16x64xf32> -> vector<16x64xf32>
    %12 = vector.extract_strided_slice %11 {offsets = [0, 0], sizes = [16, 32], strides = [1, 1]} : vector<16x64xf32> to vector<16x32xf32>
    %c0_15 = arith.constant 0 : index
    %c0_16 = arith.constant 0 : index
    %13 = vector.load %arg4[%c0_15, %c0_16] : memref<16x32xf32, #tpu.memory_space<vmem>>, vector<16x32xf32>
    %14 = arith.addf %12, %13 : vector<16x32xf32>
    %15 = vector.extract_strided_slice %11 {offsets = [0, 32], sizes = [16, 32], strides = [1, 1]} : vector<16x64xf32> to vector<16x32xf32>
    %cst_17 = arith.constant dense<0.000000e+00> : vector<6x16xf32>
    %16 = tpu.matmul %9, %14, %cst_17 {dimension_numbers = #tpu.dot_dimension_numbers<[1], [1], [0], [0], [0, 0, 1, 0], [], []>} : vector<6x32xf32>, vector<16x32xf32>, vector<6x16xf32> -> vector<6x16xf32>
    %cst_18 = arith.constant dense<0xFF800000> : vector<6xf32>
    %17 = vector.multi_reduction <maximumf>, %16, %cst_18 [1] : vector<6x16xf32> to vector<6xf32>
    %18 = vector.shape_cast %17 : vector<6xf32> to vector<6x1xf32>
    %19 = vector.broadcast %18 : vector<6x1xf32> to vector<6x16xf32>
    %20 = arith.subf %16, %19 : vector<6x16xf32>
    %21 = math.exp %20 : vector<6x16xf32>
    %cst_19 = arith.constant dense<0.000000e+00> : vector<6xf32>
    %22 = vector.multi_reduction <add>, %21, %cst_19 [1] : vector<6x16xf32> to vector<6xf32>
    %23 = vector.shape_cast %22 : vector<6xf32> to vector<6x1xf32>
    %24 = tpu.reciprocal %23 {approx = true} : vector<6x1xf32> -> vector<6x1xf32>
    %25 = vector.broadcast %24 : vector<6x1xf32> to vector<6x16xf32>
    %26 = arith.mulf %21, %25 : vector<6x16xf32>
    %cst_20 = arith.constant dense<0.000000e+00> : vector<6x32xf32>
    %27 = tpu.matmul %26, %15, %cst_20 {dimension_numbers = #tpu.dot_dimension_numbers<[1], [0], [0], [1], [0, 0, 1, 1], [], []>} : vector<6x16xf32>, vector<16x32xf32>, vector<6x32xf32> -> vector<6x32xf32>
    %c0_21 = arith.constant 0 : index
    %c0_22 = arith.constant 0 : index
    %28 = vector.load %arg8[%c0_21, %c0_22] : memref<32x32xf32, #tpu.memory_space<vmem>>, vector<32x32xf32>
    %cst_23 = arith.constant dense<0.000000e+00> : vector<6x32xf32>
    %29 = tpu.matmul %27, %28, %cst_23 {dimension_numbers = #tpu.dot_dimension_numbers<[1], [0], [0], [1], [0, 0, 1, 1], [], []>} : vector<6x32xf32>, vector<32x32xf32>, vector<6x32xf32> -> vector<6x32xf32>
    %30 = arith.addf %7, %29 : vector<6x32xf32>
    %c0_24 = arith.constant 0 : index
    %c0_25 = arith.constant 0 : index
    %31 = vector.load %arg9[%c0_24, %c0_25] : memref<32x64xf32, #tpu.memory_space<vmem>>, vector<32x64xf32>
    %cst_26 = arith.constant dense<0.000000e+00> : vector<6x64xf32>
    %32 = tpu.matmul %30, %31, %cst_26 {dimension_numbers = #tpu.dot_dimension_numbers<[1], [0], [0], [1], [0, 0, 1, 1], [], []>} : vector<6x32xf32>, vector<32x64xf32>, vector<6x64xf32> -> vector<6x64xf32>
    %c0_27 = arith.constant 0 : index
    %c0_28 = arith.constant 0 : index
    %33 = vector.load %arg10[%c0_27, %c0_28] : memref<1x64xf32, #tpu.memory_space<vmem>>, vector<1x64xf32>
    %34 = vector.broadcast %33 : vector<1x64xf32> to vector<6x64xf32>
    %35 = arith.addf %32, %34 : vector<6x64xf32>
    %cst_29 = arith.constant 0.000000e+00 : f32
    %36 = vector.broadcast %cst_29 : f32 to vector<6x64xf32>
    %37 = arith.maximumf %35, %36 : vector<6x64xf32>
    %c0_30 = arith.constant 0 : index
    %c0_31 = arith.constant 0 : index
    %38 = vector.load %arg11[%c0_30, %c0_31] : memref<64x32xf32, #tpu.memory_space<vmem>>, vector<64x32xf32>
    %cst_32 = arith.constant dense<0.000000e+00> : vector<6x32xf32>
    %39 = tpu.matmul %37, %38, %cst_32 {dimension_numbers = #tpu.dot_dimension_numbers<[1], [0], [0], [1], [0, 0, 1, 1], [], []>} : vector<6x64xf32>, vector<64x32xf32>, vector<6x32xf32> -> vector<6x32xf32>
    %40 = arith.addf %30, %39 : vector<6x32xf32>
    %c0_33 = arith.constant 0 : index
    %c0_34 = arith.constant 0 : index
    %41 = vector.load %arg12[%c0_33, %c0_34] : memref<1x32xf32, #tpu.memory_space<vmem>>, vector<1x32xf32>
    %42 = vector.broadcast %41 : vector<1x32xf32> to vector<6x32xf32>
    %43 = arith.addf %40, %42 : vector<6x32xf32>
    %44 = vector.extract_strided_slice %43 {offsets = [0, 0], sizes = [4, 32], strides = [1, 1]} : vector<6x32xf32> to vector<4x32xf32>
    %c0_35 = arith.constant 0 : index
    %c0_36 = arith.constant 0 : index
    %45 = vector.load %arg13[%c0_35, %c0_36] : memref<32x35xf32, #tpu.memory_space<vmem>>, vector<32x35xf32>
    %cst_37 = arith.constant dense<0.000000e+00> : vector<4x35xf32>
    %46 = tpu.matmul %44, %45, %cst_37 {dimension_numbers = #tpu.dot_dimension_numbers<[1], [0], [0], [1], [0, 0, 1, 1], [], []>} : vector<4x32xf32>, vector<32x35xf32>, vector<4x35xf32> -> vector<4x35xf32>
    %47 = vector.extract_strided_slice %46 {offsets = [1, 0], sizes = [3, 32], strides = [1, 1]} : vector<4x35xf32> to vector<3x32xf32>
    %48 = vector.extract_strided_slice %46 {offsets = [0, 32], sizes = [1, 3], strides = [1, 1]} : vector<4x35xf32> to vector<1x3xf32>
    %cst_38 = arith.constant dense<0.000000e+00> : vector<3x16xf32>
    %49 = tpu.matmul %47, %5, %cst_38 {dimension_numbers = #tpu.dot_dimension_numbers<[1], [1], [0], [0], [0, 0, 1, 0], [], []>} : vector<3x32xf32>, vector<16x32xf32>, vector<3x16xf32> -> vector<3x16xf32>
    %cst_39 = arith.constant 0.000000e+00 : f32
    %50 = vector.broadcast %cst_39 : f32 to vector<3x112xf32>
    %51 = tpu.concatenate %49, %50 in 1 : vector<3x16xf32>, vector<3x112xf32> -> vector<3x128xf32>
    %cst_40 = arith.constant 0.000000e+00 : f32
    %52 = vector.broadcast %cst_40 : f32 to vector<1x125xf32>
    %53 = tpu.concatenate %48, %52 in 1 : vector<1x3xf32>, vector<1x125xf32> -> vector<1x128xf32>
    %cst_41 = arith.constant 0.000000e+00 : f32
    %54 = vector.broadcast %cst_41 : f32 to vector<4x128xf32>
    %55 = tpu.concatenate %51, %53, %54 in 0 : vector<3x128xf32>, vector<1x128xf32>, vector<4x128xf32> -> vector<8x128xf32>
    %c0_42 = arith.constant 0 : index
    %c0_43 = arith.constant 0 : index
    %c0_44 = arith.constant 0 : index
    %56 = vector.load %arg14[%c0_42, %c0_43, %c0_44] : memref<1x8x128xf32, #tpu.memory_space<vmem>>, vector<1x8x128xf32>
    %57 = vector.shape_cast %56 : vector<1x8x128xf32> to vector<8x128xf32>
    %58 = vector.shape_cast %55 : vector<8x128xf32> to vector<1x8x128xf32>
    tpu.vector_store %arg14[%c0_42, %c0_43, %c0_44], %58 {strides = array<i32>} : memref<1x8x128xf32, #tpu.memory_space<vmem>>, vector<1x8x128xf32>,
    return
  }
  func.func @transform_0(%arg0: i32) -> (i32, i32, i32) {
    %c0_i32 = arith.constant 0 : i32
    %c0_i32_0 = arith.constant 0 : i32
    %c0_i32_1 = arith.constant 0 : i32
    return %arg0, %c0_i32, %c0_i32_0 : i32, i32, i32
  }
  func.func @transform_1(%arg0: i32) -> (i32, i32) {
    %c0_i32 = arith.constant 0 : i32
    %c0_i32_0 = arith.constant 0 : i32
    %c0_i32_1 = arith.constant 0 : i32
    return %c0_i32, %c0_i32_0 : i32, i32
  }
  func.func @transform_2(%arg0: i32) -> (i32, i32) {
    %c0_i32 = arith.constant 0 : i32
    %c0_i32_0 = arith.constant 0 : i32
    %c0_i32_1 = arith.constant 0 : i32
    return %c0_i32, %c0_i32_0 : i32, i32
  }
  func.func @transform_3(%arg0: i32) -> (i32, i32) {
    %c0_i32 = arith.constant 0 : i32
    %c0_i32_0 = arith.constant 0 : i32
    %c0_i32_1 = arith.constant 0 : i32
    return %c0_i32, %c0_i32_0 : i32, i32
  }
  func.func @transform_4(%arg0: i32) -> (i32, i32, i32) {
    %c0_i32 = arith.constant 0 : i32
    %c0_i32_0 = arith.constant 0 : i32
    %c0_i32_1 = arith.constant 0 : i32
    return %arg0, %c0_i32, %c0_i32_0 : i32, i32, i32
  }
  func.func @transform_5(%arg0: i32) -> (i32, i32) {
    %c0_i32 = arith.constant 0 : i32
    %c0_i32_0 = arith.constant 0 : i32
    %c0_i32_1 = arith.constant 0 : i32
    return %c0_i32, %c0_i32_0 : i32, i32
  }
  func.func @transform_6(%arg0: i32) -> (i32, i32) {
    %c0_i32 = arith.constant 0 : i32
    %c0_i32_0 = arith.constant 0 : i32
    %c0_i32_1 = arith.constant 0 : i32
    return %c0_i32, %c0_i32_0 : i32, i32
  }
  func.func @transform_7(%arg0: i32) -> (i32, i32) {
    %c0_i32 = arith.constant 0 : i32
    %c0_i32_0 = arith.constant 0 : i32
    %c0_i32_1 = arith.constant 0 : i32
    return %c0_i32, %c0_i32_0 : i32, i32
  }
  func.func @transform_8(%arg0: i32) -> (i32, i32) {
    %c0_i32 = arith.constant 0 : i32
    %c0_i32_0 = arith.constant 0 : i32
    %c0_i32_1 = arith.constant 0 : i32
    return %c0_i32, %c0_i32_0 : i32, i32
  }
  func.func @transform_9(%arg0: i32) -> (i32, i32) {
    %c0_i32 = arith.constant 0 : i32
    %c0_i32_0 = arith.constant 0 : i32
    %c0_i32_1 = arith.constant 0 : i32
    return %c0_i32, %c0_i32_0 : i32, i32
  }
  func.func @transform_10(%arg0: i32) -> (i32, i32) {
    %c0_i32 = arith.constant 0 : i32
    %c0_i32_0 = arith.constant 0 : i32
    %c0_i32_1 = arith.constant 0 : i32
    return %c0_i32, %c0_i32_0 : i32, i32
  }
  func.func @transform_11(%arg0: i32) -> (i32, i32) {
    %c0_i32 = arith.constant 0 : i32
    %c0_i32_0 = arith.constant 0 : i32
    %c0_i32_1 = arith.constant 0 : i32
    return %c0_i32, %c0_i32_0 : i32, i32
  }
  func.func @transform_12(%arg0: i32) -> (i32, i32) {
    %c0_i32 = arith.constant 0 : i32
    %c0_i32_0 = arith.constant 0 : i32
    %c0_i32_1 = arith.constant 0 : i32
    return %c0_i32, %c0_i32_0 : i32, i32
  }
  func.func @transform_13(%arg0: i32) -> (i32, i32, i32) {
    %c0_i32 = arith.constant 0 : i32
    %c0_i32_0 = arith.constant 0 : i32
    %c0_i32_1 = arith.constant 0 : i32
    return %arg0, %c0_i32, %c0_i32_0 : i32, i32, i32
  }
}

</mosaic_0001>

<bundles_post_ra>
// kernel: tpu_custom_call.1
= control target key start
LH: loop header
LB: loop body
LE: loop exit
PB: predicated region body
PF: predicated region fallthrough
CT: control target
= control target key end

     0   :  { %s2352_s0 = inlined_call_operand.vmem [shape: f32[2,16,48], index: 0, kind: input, shape index: {}]   ;;  %s2353_s1 = inlined_call_operand.vmem [shape: f32[48,32], index: 1, kind: input, shape index: {}]   ;;  %s2354_s2 = inlined_call_operand.hbm [shape: f32[16,32], index: 2, kind: input, shape index: {}]   ;;  %s2355_s3 = inlined_call_operand.hbm [shape: f32[16,32], index: 3, kind: input, shape index: {}]   ;;  %s2356_s4 = inlined_call_operand.vmem [shape: f32[2,6,32], index: 4, kind: input, shape index: {}]   ;;  %s2357_s5 = inlined_call_operand.vmem [shape: f32[32,32], index: 5, kind: input, shape index: {}]   ;;  %s2358_s6 = inlined_call_operand.vmem [shape: f32[32,64], index: 6, kind: input, shape index: {}]   ;;  %s2359_s7 = inlined_call_operand.vmem [shape: f32[32,32], index: 7, kind: input, shape index: {}]   ;;  %s2360_s8 = inlined_call_operand.vmem [shape: f32[32,64], index: 8, kind: input, shape index: {}]   ;;  %s2361_s9 = inlined_call_operand.vmem [shape: f32[1,64], index: 9, kind: input, shape index: {}]   ;;  %s2362_s10 = inlined_call_operand.vmem [shape: f32[64,32], index: 10, kind: input, shape index: {}]   ;;  %s2363_s11 = inlined_call_operand.vmem [shape: f32[1,32], index: 11, kind: input, shape index: {}]   ;;  %s2364_s12 = inlined_call_operand.vmem [shape: f32[32,35], index: 12, kind: input, shape index: {}]   ;;  %s2365_s13 = inlined_call_operand.hbm [shape: f32[2,8,128], index: 13, kind: output, shape index: {}]  }
   0x1   :  { %2376 = sst [smem:[#allocation17_spill]] %s2365_s13 }
   0x2   :  { %18 = vsyncpa [#allocation3], 0 }
   0x3   :  { %19 = vsyncpa [#allocation6], 0 }
   0x4   :  { %20 = vsyncpa [#allocation4], 0 }
   0x5   :  { %22 = vsyncpa [#allocation4 + $0x1], 0  ;;  %s1991_s25 = smov 0   ;;  %s1993_s26 = smov 0  }
   0x6   :  { %s1995_s27 = smov 0   ;;  %s1997_s28 = smov 0  }
   0x7 LB: > { %2377 = sst [smem:[#allocation11_spill]] %s1898_s25  ;;  %s2012_s29 = sadd.s32 4294967295, %s1910_s28   ;;  %s1910_s28 = sphi %s1997_s28, %s2400_s28   ;;  %s1906_s27 = sphi %s1995_s27, %s2402_s27   ;;  %s1902_s26 = sphi %s1993_s26, %s2404_s26   ;;  %s1898_s25 = sphi %s1991_s25, %s2403_s25  }
   0x8   : > { %2378 = sst [smem:[#allocation12_spill]] %s1906_s27  ;;  %s1445_s30 = sadd.s32 4294967294, %s1910_s28  }
   0x9   : > { %2379 = sst [smem:[#allocation13_spill]] %s1910_s28  ;;  %s2016_s14 = sadd.s32 1, %s1910_s28  }
   0xa   : > { %2380 = sst [smem:[#allocation14_spill]] %s2016_s14  ;;  %s318_s15 = sadd.s32 1, %s1906_s27 }
   0xb   : > { %s315_s16 = ssub.s32 %s1910_s28, %s2016_s14  ;;  %p328_p0 = scmp.ne.s32.totalorder %s1906_s27, %s1902_s26 }
   0xc   : > { %p316_p1 = scmp.eq.s32.totalorder %s315_s16, 0  ;;  %p329_p2 = scmp.eq.s32.totalorder %s2012_s29, 1 }
   0xd   : > { %p334_p3 = scmp.ne.s32.totalorder %s1902_s26, %s1898_s25  ;;  %p335_p4 = scmp.eq.s32.totalorder %s1445_s30, 1 }
   0xe   : > { %s2027_s17 = scalar_select %p316_p1, %s1906_s27, %s318_s15  }
   0xf   : > { %p2029_p5 = por %p329_p2, %p328_p0  ;;  %p2033_p6 = por %p335_p4, %p334_p3 }
  0x10   : > { %2381 = sst [smem:[#allocation15_spill]] %s2027_s17  ;;  %p1446_p7 = scmp.ge.s32.totalorder %s1910_s28, 1 }
  0x11   : > { %s2382_s18 = scalar_select %p2029_p5, 1, 0 }
  0x12   : > { %s2383_s19 = scalar_select %p2033_p6, 1, 0 }
  0x13   : > { %p342_p8 = scmp.lt.s32.totalorder %s1910_s28, 3  ;;  %p2370_p9 = scmp.eq.s32.totalorder %s2012_s29, 0 }
  0x14   : > { %2384 = sst [smem:[#allocation16_spill]] %s2383_s19  ;;  %s1912_s21 = smov [#allocation2]  }
  0x15   : > { %p2040_p10 = pnand %p1446_p7, %p342_p8  ;;  %s357_s22 = sshll.u32 %s1912_s21, 4  ;;  %s358_s22 = int_to_ptr.vmem [resolvable:$true] %s357_s22 }
  0x16   : > { %s1913_s24 = smov [#allocation5]   ;;  %s1784_s17 = scalar_lea.hbm %s2354_s2, 256 }
  0x17   : > { %s2385_s20 = scalar_select %p2040_p10, 1, 0 }
  0x18   : > { %p1719_p11 = pneg %p2040_p10  ;;  %s370_s30 = sshll.u32 %s1913_s24, 4  ;;  %s2052_s30 = int_to_ptr.vmem [resolvable:$true] %s370_s30 }
  0x19   : > { %p1785_p13 = scmp.ne.s32.totalorder %s2354_s2, %s1784_s17  ;;  %p1791_p3 = scmp.lt.u32.totalorder %s1784_s17, %s2354_s2 }
  0x1a   : > { %p2048_p12 = pnand %p2370_p9, %p1719_p11 }
  0x1c   : > { %p1786_p0 = pneg %p2048_p12 }
  0x1e   : > { %p1787_p1 = pnand %p1786_p0, %p1785_p13 }
  0x20   : > { %p1788_p2 = pneg %p1787_p1 }
  0x22   : > { %p1793_p4 = pnand %p1791_p3, %p1788_p2 }
  0x24   : > { %1796 = shalt.err (!%p1793_p4)
}
  0x25   : > { %s1797_s24 = scalar_lea.vmem %s358_s22, 256  ;;  %p1805_p9 = scmp.lt.s32.totalorder %s358_s22, %s358_s22 }
  0x26   : > { %p1798_p7 = scmp.ne.s32.totalorder %s358_s22, %s1797_s24  ;;  %p1806_p6 = scmp.lt.s32.totalorder %s1797_s24, %s1797_s24 }
  0x28   : > { %p1800_p8 = pnand %p1798_p7, %p1786_p0  ;;  %p1807_p5 = por %p1806_p6, %p1805_p9 }
  0x2a   : > { %p1801_p11 = pneg %p1800_p8 }
  0x2c   : > { %p1808_p10 = pnand %p1807_p5, %p1801_p11 }
  0x2e   : > { %1811 = shalt.err (!%p1808_p10)
}
  0x2f   : > { %s1914_s27 = smov 128   ;;  %s1915_s15 = smov 8  }
  0x30   : > { %1722 = dma.hbm_to_vmem [thread:$0]  (!%p2048_p12), %s2354_s2, 256, %s358_s22, [#allocation3], %s1914_s27, %s1914_s27, %s1915_s15  }
  0x31   : > { %s1812_s21 = scalar_lea.hbm %s2355_s3, 256 }
  0x32   : > { %p1813_p13 = scmp.ne.s32.totalorder %s2355_s3, %s1812_s21  ;;  %p1819_p9 = scmp.lt.u32.totalorder %s1812_s21, %s2355_s3 }
  0x34   : > { %p1815_p5 = pnand %p1813_p13, %p1786_p0 }
  0x36   : > { %p1816_p6 = pneg %p1815_p5 }
  0x38   : > { %p1821_p10 = pnand %p1819_p9, %p1816_p6 }
  0x3a   : > { %1824 = shalt.err (!%p1821_p10)
}
  0x3b   : > { %s1825_s22 = scalar_lea.vmem %s2052_s30, 256  ;;  %p1833_p4 = scmp.lt.s32.totalorder %s2052_s30, %s2052_s30 }
  0x3c   : > { %p1826_p1 = scmp.ne.s32.totalorder %s2052_s30, %s1825_s22  ;;  %p1834_p7 = scmp.lt.s32.totalorder %s1825_s22, %s1825_s22 }
  0x3e   : > { %p1828_p2 = pnand %p1826_p1, %p1786_p0  ;;  %p1835_p8 = por %p1834_p7, %p1833_p4 }
  0x40   : > { %p1829_p3 = pneg %p1828_p2 }
  0x42   : > { %p1836_p11 = pnand %p1835_p8, %p1829_p3 }
  0x44   : > { %1839 = shalt.err (!%p1836_p11)
}
  0x45   : > { %1725 = dma.hbm_to_vmem [thread:$0]  (!%p2048_p12), %s2355_s3, 256, %s2052_s30, [#allocation6], %s1914_s27, %s1914_s27, %s1915_s15  }
  0x46   : > { %p2387_p13 = scmp.ne.s32.totalorder %s2385_s20, 0 }
  0x47   : > { %p2388_p5 = scmp.eq.s32.totalorder (!%p2387_p13), %s2012_s29, 0 }
  0x48   : > { %425 = sbr.rel (%p2387_p13) target bundleno = 2367 (0x93f), region = 72 }
  0x4f   : > { %1885 = dma.done.wait (%p2388_p5), [#allocation3], 256   ;;  %p2389_p0 = pmov %p2388_p5 }
  0x51   : > { %1887 = vsyncadd (%p2389_p0), [#allocation3], 4294967040  ;;  %p2390_p6 = pmov %p2389_p0 }
  0x52   : > { %p2391_p9 = pmov %p2389_p0 }
  0x53   : > { %1889 = dma.done.wait (%p2390_p6), [#allocation6], 256  }
  0x54   : > { %1891 = vsyncadd (%p2391_p9), [#allocation6], 4294967040  ;;  %p477_p10 = scmp.lt.s32.totalorder %s2012_s29, 1  ;;  %v1916_v0 = vmov 0.0|0.0   ;;  %vm1917_vm0 = vmmov 0   ;;  %v1918_v1 = vmov 0.0  }
  0x55   : > { %1654 = vmatprep.subr.bf16.mxu1 %v1916_v0  ;;  %1555 = vmatprep.mubr.msk.f32.mxu1 %vm1917_vm0, %v1918_v1  ;;  %v488_v2 = vld [vmem:[%s2353_s1] sm:$0xff]  ;;  %v489_v3 = vld [vmem:[%s2353_s1 + $0x8] sm:$0xff]  ;;  %v490_v4 = vld [vmem:[%s2353_s1 + $0x10] sm:$0xff]  ;;  %vm496_vm1 = vcmask 392192   ;;  %vm583_vm2 = vcmask 261120   ;;  %vm825_vm4 = vcmask 128000  }
  0x56   : > { %s2114_s28 = scalar_select %p477_p10, %s2012_s29, 1  ;;  %v1642_v5 = vpack.c.bf16 %v489_v3, %v488_v2  ;;  %v491_v6 = vld [vmem:[%s2353_s1 + $0x18] sm:$0xff]  ;;  %v492_v7 = vld [vmem:[%s2353_s1 + $0x20] sm:$0xff]  ;;  %v493_v9 = vld [vmem:[%s2353_s1 + $0x28] sm:$0xff]  ;;  %vm845_vm5 = vcmask 130048   ;;  %vm1090_vm6 = vcmask 523264  }
  0x57   : > { %v1646_v8 = vpack.c.bf16 %v491_v6, %v490_v4  ;;  %v579_v11 = vld [vmem:[%s2357_s5] sm:$0xff]  ;;  %v580_v12 = vld [vmem:[%s2357_s5 + $0x8] sm:$0xff]  ;;  %v581_v13 = vld [vmem:[%s2357_s5 + $0x10] sm:$0xff]  ;;  %v1650_v18 = vpack.c.bf16 %v493_v9, %v492_v7  ;;  %vm1328_vm7 = vcmask 23552   ;;  %vm1333_vm8 = vcmask 1042432   ;;  %s1476_s25 = sshll.u32 %s2012_s29, 7 }
  0x58   : > { %s1479_s20 = sshll.u32 %s2114_s28, 4  ;;  %1643 = vmatprep.subr.bf16.mxu0 %v1642_v5  ;;  %v582_v14 = vld [vmem:[%s2357_s5 + $0x18] sm:$0xff]  ;;  %v1655_v15 = vpack.c.bf16 %v580_v12, %v579_v11  ;;  %s1456_s22 = sshll.u32 %s2114_s28, 3  ;;  %v657_v16 = vld [vmem:[%s2358_s6] sm:$0xff]  ;;  %v658_v17 = vld [vmem:[%s2358_s6 + $0x8] sm:$0xff]  ;;  %vm1335_vm9 = vcmask 1043456  }
  0x59   : > { %s2122_s27 = scalar_lea.vmem %s2352_s0, %s1479_s20  ;;  %1645 = vmatpush3.bf16.msra.mxu0 %v1642_v5  ;;  %v1658_v19 = vpack.c.bf16 %v582_v14, %v581_v13  ;;  %s485_s14 = scalar_lea.vmem %s2356_s4, %s1456_s22  ;;  %v1660_v20 = vpack.c.bf16 %v658_v17, %v657_v16  ;;  %v659_v23 = vld [vmem:[%s2358_s6 + $0x10] sm:$0xff]  ;;  %v660_v24 = vld [vmem:[%s2358_s6 + $0x18] sm:$0xff]  ;;  %v495_v26 = vld [vmem:[#allocation2 + $0x8] sm:$0xff] }
  0x5a   : > { %v486_v10 = vld [vmem:[%s2122_s27] sm:$0xff]  ;;  %1647 = vmatprep.subr.bf16.mxu0 %v1646_v8  ;;  %1656 = vmatpush3.bf16.msra.mxu1 %v1655_v15  ;;  %v487_v22 = vld [vmem:[%s2122_s27 + $0x8] sm:$0xff]  ;;  %v1664_v25 = vpack.c.bf16 %v660_v24, %v659_v23  ;;  %v743_v35 = vld [vmem:[#allocation5 + $0x8] sm:$0xff]  ;;  %s1919_s27 = smov 96   ;;  %s474_s22 = sand.u32 1, %s1902_s26  }
  0x5b   : > { %1544 = vmatprep.mubr.msk.f32.mxu0 %vm496_vm1, %v486_v10  ;;  %1657 = vmatprep.subr.bf16.mxu1 %v1916_v0  ;;  %v2167_v21 = vld [vmem:[%s485_s14] sm:$0x3f]  ;;  %v742_v36 = vld [vmem:[#allocation5] sm:$0xff]  ;;  %vm2197_vm3 = vmpackc.low %vm583_vm2, %vm583_vm2  ;;  %s1453_s13 = sshll.u32 %s474_s22, 3  ;;  %s2394_s15 = sld [smem:[#allocation17_spill]] }
  0x5c   : > { %v494_v28 = vld [vmem:[#allocation2] sm:$0xff]  ;;  %v920_v57 = vld [vmem:[%s2359_s7 + $0x8] sm:$0xff]  ;;  %v921_v58 = vld [vmem:[%s2359_s7 + $0x10] sm:$0xff]  ;;  %s476_s20 = scalar_lea.vmem [#allocation7], %s1453_s13  ;;  %s1339_s29 = scalar_lea.sflag [#allocation4], %s474_s22 }
  0x5d   : > { %1649 = vmatpush3.bf16.msra.mxu0 %v1646_v8  ;;  %v919_v56 = vld [vmem:[%s2359_s7] sm:$0xff]  ;;  %v922_v60 = vld [vmem:[%s2359_s7 + $0x18] sm:$0xff]  ;;  %v998_v4 = vld [vmem:[%s2360_s8 + $0x8] sm:$0xff]  ;;  %s1352_s23 = sshll.u32 %s476_s20, 4  ;;  %p2395_p1 = scmp.ne.s32.totalorder %s2382_s18, 0  ;;  %s2312_s23 = int_to_ptr.vmem [resolvable:$true] %s1352_s23 }
  0x5e   : > { %1651 = vmatprep.subr.bf16.mxu0 %v1650_v18  ;;  %1659 = vmatpush3.bf16.msra.mxu1 %v1658_v19  ;;  %v1676_v59 = vpack.c.bf16 %v920_v57, %v919_v56  ;;  %v1679_v61 = vpack.c.bf16 %v922_v60, %v921_v58  ;;  %v997_v3 = vld [vmem:[%s2360_s8] sm:$0xff]  ;;  %v999_v8 = vld [vmem:[%s2360_s8 + $0x10] sm:$0xff]  ;;  %v1000_v9 = vld [vmem:[%s2360_s8 + $0x18] sm:$0xff]  ;;  %s1840_s28 = scalar_lea.vmem %s2312_s23, 128  ;;  %s1920_s17 = smov [#allocation7]  }
  0x5f   : > { %1661 = vmatprep.subr.bf16.mxu1 %v1660_v20  ;;  %v1682_v5 = vpack.c.bf16 %v998_v4, %v997_v3  ;;  %v1685_v10 = vpack.c.bf16 %v1000_v9, %v999_v8  ;;  %v1082_v11 = vld [vmem:[%s2362_s10] sm:$0xff]  ;;  %v1083_v12 = vld [vmem:[%s2362_s10 + $0x8] sm:$0xff]  ;;  %v1084_v13 = vld [vmem:[%s2362_s10 + $0x10] sm:$0xff]  ;;  %p1841_p12 = scmp.ne.s32.totalorder %s2312_s23, %s1840_s28  ;;  %s1844_s19 = sshll.u32 %s1920_s17, 4  ;;  %s1845_s19 = int_to_ptr.vmem [resolvable:$false] %s1844_s19 }
  0x60   : > { %v1688_v14 = vpack.c.bf16 %v1083_v12, %v1082_v11  ;;  %v1085_v15 = vld [vmem:[%s2362_s10 + $0x18] sm:$0xff]  ;;  %v1086_v17 = vld [vmem:[%s2362_s10 + $0x20] sm:$0xff]  ;;  %v1088_v24 = vld [vmem:[%s2362_s10 + $0x30] sm:$0xff]  ;;  %s1846_s16 = scalar_lea.vmem %s1845_s19, 256  ;;  %p1847_p4 = scmp.lt.s32.totalorder %s2312_s23, %s1845_s19 }
  0x61   : > { %1653 = vmatpush3.bf16.msra.mxu0 %v1650_v18  ;;  %1556 = vmatmul.mubr.msk.f32.vlgmr.msra.gmra.mrb[0].mxu1 %vm583_vm2, %v2167_v21  ;;  %v1691_v16 = vpack.c.bf16 %v1085_v15, %v1084_v13  ;;  %v1087_v18 = vld [vmem:[%s2362_s10 + $0x28] sm:$0xff]  ;;  %s2310_s14 = scalar_lea.hbm %s2394_s15, %s1476_s25  ;;  %p1842_p2 = pnand %p1841_p12, %p2395_p1 }
  0x62   : > { %1668 = vmatprep.subr.bf16.mxu0 %v1916_v0  ;;  %1663 = vmatpush3.bf16.msra.mxu1 %v1660_v20  ;;  %v1694_v19 = vpack.c.bf16 %v1087_v18, %v1086_v17  ;;  %p1848_p7 = scmp.lt.s32.totalorder %s1846_s16, %s1840_s28 }
  0x63   : > { %1665 = vmatprep.subr.bf16.mxu1 %v1664_v25  ;;  %p1843_p3 = pneg %p1842_p2 }
  0x64   : > { %1545 = vmatmul.mubr.msk.f32.vlgmr.msra.gmra.mrb[0].mxu0 %vm496_vm1, %v487_v22  ;;  %p1849_p8 = por %p1848_p7, %p1847_p4 }
  0x65   : > { %1573 = vmatprep.mubr.msk.f32.mxu0 %vm1917_vm0, %v1918_v1 }
  0x66   : > { %1667 = vmatpush3.bf16.msra.mxu1 %v1664_v25  ;;  %v1089_v25 = vld [vmem:[%s2362_s10 + $0x38] sm:$0xff]  ;;  %p1850_p11 = pnand %p1849_p8, %p1843_p3 }
  0x67   : > { %1672 = vmatprep.subr.bf16.mxu1 %v1916_v0 }
 0x134   : > { %v653_v27 = vpop.f32.mrb[0].mxu1 }
 0x135   : > { %v1557_v29 = vpop.f32.mrb[1].mxu1 }
 0x137   : > { %v1546_v30 = vpop.f32.mrb[0].mxu0 }
 0x138   : > { %v2183_v31 = vadd.f32 %v1546_v30, %v495_v26  ;;  %v569_v32 = vpop.f32.mrb[1].mxu0  ;;  %v1697_v26 = vpack.c.bf16 %v1089_v25, %v1088_v24  ;;  %v1176_v30 = vld [vmem:[%s2364_s12 + $0x18] sm:$0xff] }
 0x139   : > { %v2185_v33 = vadd.f32 %v569_v32, %v494_v28  ;;  %v1175_v28 = vld [vmem:[%s2364_s12 + $0x10] sm:$0xff] }
 0x13a   : > { %v1703_v32 = vpack.c.bf16 %v1176_v30, %v1175_v28 }
 0x13b   : > { %v1706_v34 = vpack.c.bf16 %v2183_v31, %v2185_v33  ;;  %1566 = vmatprep.mubr.msk.f32.mxu1 %vm583_vm2, %v2185_v33 }
 0x13c   : > { %1567 = vmatmul.mubr.msk.f32.vlgmr.msra.gmra.mrb[2].mxu1 %vm583_vm2, %v2183_v31 }
 0x13d   : > { %1580 = vmatprep.mubr.msk.f32.mxu1 %vm1917_vm0, %v1918_v1 }
 0x20f   : > { %v1568_v37 = vpop.f32.mrb[2].mxu1 }
 0x210   : > { %v745_v38 = vadd.f32 %v1568_v37, %v743_v35  ;;  %v733_v39 = vpop.f32.mrb[3].mxu1  ;;  %v1467_v35 = vld [vmem:[%s2361_s9] ss:$0 sm:$0xff] }
 0x211   : > { %v744_v40 = vadd.f32 %v742_v36, %v733_v39  ;;  %v1775_v41 = vpack.i.bf16 %v1568_v37, %v733_v39 }
 0x213   : > { %v1669_v43 = vpack.c.bf16 %v745_v38, %v744_v40  ;;  %1776 = vrot.lane.b32.xlu1 %v1775_v41, %s1919_s27  ;;  %v1470_v41 = vld [vmem:[%s2363_s11] ss:$0 sm:$0xff] }
 0x215   : > { %1671 = vmatpush3.bf16.xpose.msk.msra.mxu0 %vm2197_vm3, %v1669_v43 }
 0x216   : > { %1675 = vmatprep.subr.bf16.mxu0 %v1916_v0 }
 0x21c   : > { %1574 = vmatmul.mubr.msk.f32.vlgmr.msra.gmra.mrb[2].mxu0 %vm583_vm2, %v653_v27  ;;  %v1174_v27 = vld [vmem:[%s2364_s12 + $0x8] sm:$0xff] }
 0x21d   : > { %1591 = vmatprep.mubr.msk.f32.mxu0 %vm1917_vm0, %v1918_v1  ;;  %1677 = vmatpush3.bf16.msra.mxu0 %v1676_v59 }
 0x21e   : > { %1678 = vmatprep.subr.bf16.mxu0 %v1916_v0 }
 0x221   : > { %1680 = vmatpush3.bf16.msra.mxu0 %v1679_v61 }
 0x222   : > { %1687 = vmatprep.subr.bf16.mxu0 %v1916_v0 }
 0x285   : > { %v1777_v44 = vpop.permute.xlu1 %1776 }
 0x286   : > { %v1779_v45 = vunpack.i.h.bf16 %v1777_v44  ;;  %v1778_v46 = vunpack.i.l.bf16 %v1777_v44 }
 0x288   : > { %v1673_v47 = vpack.c.bf16 %v1779_v45, %v1778_v46 }
 0x28a   : > { %1674 = vmatpush3.bf16.msra.mxu1 %v1673_v47 }
 0x28b   : > { %1681 = vmatprep.subr.bf16.mxu1 %v1916_v0 }
 0x2ef   : > { %v821_v48 = vpop.f32.mrb[2].mxu0 }
 0x2f0   : > { %v1575_v49 = vpop.f32.mrb[3].mxu0  ;;  %v826_v50 = vsel %vm825_vm4, %v821_v48, -inf }
 0x2f1   : > { %827 = vmax.xlane.f32.xlu0 %v826_v50 }
 0x37e   : > { %v828_v51 = vpop.xlane.xlu0 %827 }
 0x37f   : > { %v829_v52 = vsub.f32 %v821_v48, %v828_v51 }
 0x381   : > { %v830_v53 = vmul.f32 1.442695, %v829_v52 }
 0x383   : > { %1780 = vpow2.f32 %v830_v53 }
 0x38d   : > { %v1781_v54 = vpop.eup %1780 }
 0x38e   : > { %v832_v55 = vsel %vm825_vm4, %v1781_v54, 0.0 }
 0x38f   : > { %833 = vadd.xlane.f32.xlu0 %v832_v55 }
 0x41c   : > { %v834_v62 = vpop.xlane.xlu0 %833 }
 0x41d   : > { %1782 = vrcp.f32 %v834_v62 }
 0x427   : > { %v1783_v63 = vpop.eup %1782 }
 0x428   : > { %v836_v2 = vmul.f32 %v1783_v63, %v1781_v54 }
 0x42a   : > { %1581 = vmatmul.mubr.msk.f32.vlgmr.msra.gmra.mrb[4].mxu1 %vm845_vm5, %v836_v2 }
 0x42b   : > { %1602 = vmatprep.mubr.msk.f32.mxu1 %vm1917_vm0, %v1918_v1  ;;  %1683 = vmatpush3.bf16.msra.mxu1 %v1682_v5 }
 0x42c   : > { %1684 = vmatprep.subr.bf16.mxu1 %v1916_v0 }
 0x42f   : > { %1686 = vmatpush3.bf16.msra.mxu1 %v1685_v10 }
 0x430   : > { %1699 = vmatprep.subr.bf16.mxu1 %v1916_v0 }
 0x4fd   : > { %v915_v6 = vpop.f32.mrb[4].mxu1 }
 0x4fe   : > { %v1582_v7 = vpop.f32.mrb[5].mxu1  ;;  %1592 = vmatmul.mubr.msk.f32.vlgmr.msra.gmra.mrb[4].mxu0 %vm583_vm2, %v915_v6 }
 0x4ff   : > { %1621 = vmatprep.mubr.msk.f32.mxu0 %vm1917_vm0, %v1918_v1  ;;  %1689 = vmatpush3.bf16.msra.mxu0 %v1688_v14 }
 0x500   : > { %1690 = vmatprep.subr.bf16.mxu0 %v1916_v0 }
 0x503   : > { %1692 = vmatpush3.bf16.msra.mxu0 %v1691_v16 }
 0x504   : > { %1693 = vmatprep.subr.bf16.mxu0 %v1916_v0 }
 0x507   : > { %1695 = vmatpush3.bf16.msra.mxu0 %v1694_v19 }
 0x508   : > { %1696 = vmatprep.subr.bf16.mxu0 %v1916_v0 }
 0x50b   : > { %1698 = vmatpush3.bf16.msra.mxu0 %v1697_v26 }
 0x5d1   : > { %v992_v20 = vpop.f32.mrb[4].mxu0 }
 0x5d2   : > { %v996_v22 = vadd.f32 %v992_v20, %v2167_v21  ;;  %v1593_v23 = vpop.f32.mrb[5].mxu0  ;;  %v1173_v21 = vld [vmem:[%s2364_s12] sm:$0xff] }
 0x5d3   : > { %v1700_v29 = vpack.c.bf16 %v1174_v27, %v1173_v21 }
 0x5d4   : > { %1603 = vmatmul.mubr.msk.f32.vlgmr.msra.gmra.mrb[6].mxu1 %vm583_vm2, %v996_v22 }
 0x5d5   : > { %1632 = vmatprep.mubr.msk.f32.mxu1 %vm1917_vm0, %v1918_v1  ;;  %1701 = vmatpush3.bf16.msra.mxu1 %v1700_v29 }
 0x5d6   : > { %1702 = vmatprep.subr.bf16.mxu1 %v1916_v0 }
 0x5d9   : > { %1704 = vmatpush3.bf16.msra.mxu1 %v1703_v32 }
 0x5da   : > { %1705 = vmatprep.subr.bf16.mxu1 %v1916_v0 }
 0x6a7   : > { %v1077_v36 = vpop.f32.mrb[6].mxu1 }
 0x6a8   : > { %v1078_v37 = vadd.f32 %v1467_v35, %v1077_v36  ;;  %v1604_v38 = vpop.f32.mrb[7].mxu1 }
 0x6aa   : > { %v1081_v39 = vmax.f32 %v1078_v37, 0.0 }
 0x6ac   : > { %1622 = vmatmul.mubr.msk.f32.vlgmr.msra.gmra.mrb[6].mxu0 %vm1090_vm6, %v1081_v39 }
 0x77f   : > { %v1160_v40 = vpop.f32.mrb[6].mxu0 }
 0x780   : > { %v1164_v43 = vadd.f32 %v1160_v40, %v996_v22  ;;  %v1623_v44 = vpop.f32.mrb[7].mxu0 }
 0x782   : > { %v1172_v0 = vadd.f32 %v1470_v41, %v1164_v43 }
 0x784   : > { %1633 = vmatmul.mubr.msk.f32.vlgmr.msra.gmra.mrb[8].mxu1 %vm583_vm2, %v1172_v0 }
 0x785   : > { %1708 = vmatpush3.bf16.xpose.msk.msra.mxu1 %vm2197_vm3, %v1706_v34  ;;  %1639 = vmatprep.mubr.msk.f32.mxu1 %vm1917_vm0, %v1918_v1 }
 0x857   : > { %v1246_v45 = vpop.f32.mrb[8].mxu1 }
 0x858   : > { %v1251_v46 = vrot.slane %v1246_v45, 1  ;;  %1325 = vrot.lane.b32.xlu1 %v1246_v45, %s1919_s27  ;;  %v1634_v47 = vpop.f32.mrb[9].mxu1 }
 0x85a   : > { %1640 = vmatmul.mubr.msk.f32.vlgmr.msra.gmra.mrb[10].mxu1 %vm583_vm2, %v1251_v46 }
 0x8ca   : > { %v1326_v48 = vpop.permute.xlu1 %1325 }
 0x8cb   : > { %v1329_v49 = vsel %vm1328_vm7, %v1326_v48, 0.0 }
 0x8cc   : > { %v1331_v31 = vrot.slane %v1329_v49, 5 }
 0x92d   : > { %v1320_v33 = vpop.f32.mrb[10].mxu1 }
 0x92e   : > { %v1324_v1 = vsel %vm845_vm5, %v1320_v33, 0.0  ;;  %v1641_v34 = vpop.f32.mrb[11].mxu1 }
 0x92f   : > { %v1334_v42 = vsel %vm1333_vm8, %v1324_v1, %v1331_v31 }
 0x930   : > { %v1336_v50 = vsel %vm1335_vm9, %v1334_v42, 0.0 }
 0x931   : > { %1337 = vst [vmem:[%s476_s20] sm:$0xff] %v1336_v50 }
 0x932   : > { %1853 = shalt.err (!%p1850_p11)
}
 0x933   : > { %s1854_s21 = scalar_lea.hbm %s2310_s14, 128  ;;  %s1858_s13 = scalar_lea.hbm %s2394_s15, 256 }
 0x934   : > { %p1855_p13 = scmp.ne.s32.totalorder %s2310_s14, %s1854_s21  ;;  %p1859_p6 = scmp.lt.u32.totalorder %s2310_s14, %s2394_s15 }
 0x935   : > { %p1860_p9 = scmp.lt.u32.totalorder %s1858_s13, %s1854_s21  ;;  %p1862_p12 = scmp.lt.u32.totalorder %s1854_s21, %s2310_s14 }
 0x936   : > { %p1856_p5 = pnand %p1855_p13, %p2395_p1 }
 0x937   : > { %p1861_p10 = por %p1860_p9, %p1859_p6 }
 0x938   : > { %p1857_p0 = pneg %p1856_p5 }
 0x939   : > { %p1863_p2 = por %p1862_p12, %p1861_p10 }
 0x93b   : > { %p1864_p3 = pnand %p1863_p2, %p1857_p0 }
 0x93d   : > { %1867 = shalt.err (!%p1864_p3)
}
 0x93e   : > { %1717 = dma.vmem_to_hbm [thread:$0]  (%p2395_p1), %s2312_s23, 128, %s2310_s14, %s1339_s29  }
 0x93f PF: > { %s2396_s27 = sld [smem:[#allocation13_spill]]  ;;  %s2397_s30 = sld [smem:[#allocation11_spill]] }
 0x940   : > { %s2398_s28 = sld [smem:[#allocation16_spill]] }
 0x945   : > { %p1734_p4 = scmp.ge.s32.totalorder %s2396_s27, 2  ;;  %s1364_s17 = sand.u32 1, %s2397_s30  }
 0x946   : > { %p2399_p7 = scmp.ne.s32.totalorder %s2398_s28, 0  ;;  %s1365_s19 = scalar_lea.sflag [#allocation4], %s1364_s17 }
 0x948   : > { %p1727_p8 = pnand %p1734_p4, %p2399_p7 }
 0x94a   : > { %1893 = dma.done.wait (!%p1727_p8), %s1365_s19, 128  }
 0x94b   : > { %1895 = vsyncadd (!%p1727_p8), %s1365_s19, 4294967168  ;;  %s2400_s28 = sld [smem:[#allocation14_spill]]  ;;  %s2401_s16 = sld [smem:[#allocation12_spill]] }
 0x94c   : > { %s2402_s27 = sld [smem:[#allocation15_spill]]  ;;  %s2403_s25 = smov %s1902_s26 }
 0x951   : > { %p25_p11 = scmp.ge.s32.totalorder %s2400_s28, 4   ;;  %s2404_s26 = smov %s2401_s16 }
 0x953   :  { %27 = sbr.rel (!%p25_p11) target bundleno = 7 (0x7), region = 119 }
 0x95a   :  { %1370 = vsyncpa [#allocation3], 1 }
 0x95b   :  { %1372 = vsyncpa [#allocation3 + $0x1], 1 }
 0x95c   :  { %1373 = vsyncpa [#allocation6], 1 }
 0x95d   :  { %1374 = vsyncpa [#allocation4], 1 }
 0x95e   :  { %1376 = vsyncpa [#allocation4 + $0x1], 1 }

</bundles_post_ra>
